<compile_context>
chip_gen: v7x
topology: tpu7x:2x2x1
jax: 0.10.0
libtpu: 0.0.40
codegen_flags: <defaults>
</compile_context>

<pallas_src>
import functools

import jax
import jax.numpy as jnp
from jax.experimental import pallas as pl
from jax.experimental.pallas import tpu as pltpu

LANES = 128
SUBLANES = 8
CHUNK = LANES * SUBLANES      # 1024 elements: minimum aligned unit for the kernel
MAX_TILE_ROWS = 8192          # (8192, 128) f32 tile = 4 MiB per operand


def _sq_diff_sum_kernel(a_ref, b_ref, o_ref, acc_ref, *,
                        num_rows, tiles_per_core, tile_rows):
    c = pl.program_id(0)      # core split (size 1 on single-TC chips)
    i = pl.program_id(1)      # row-tile reduction loop ("arbitrary")

    @pl.when(i == 0)
    def _():
        acc_ref[...] = jnp.zeros_like(acc_ref)

    d = a_ref[...].astype(jnp.float32) - b_ref[...].astype(jnp.float32)
    sq = d * d

    base_row = (c * tiles_per_core + i) * tile_rows
    is_boundary = base_row + tile_rows > num_rows

    # Interior tiles: bare accumulate into the (8, 128) vector accumulator.
    @pl.when(jnp.logical_not(is_boundary))
    def _():
        acc_ref[...] += jnp.sum(
            sq.reshape(tile_rows // SUBLANES, SUBLANES, LANES), axis=0)

    # Boundary tiles (tail of the last tile and/or a clamped redundant tile):
    # mask rows past the end of the array with a select (NOT multiply-by-mask,
    # so garbage/NaN in the unspecified padding cannot poison the sum).
    @pl.when(is_boundary)
    def _():
        row_ids = base_row + jax.lax.broadcasted_iota(
            jnp.int32, (tile_rows, 1), 0)
        sq_m = jnp.where(row_ids < num_rows, sq, 0.0)
        acc_ref[...] += jnp.sum(
            sq_m.reshape(tile_rows // SUBLANES, SUBLANES, LANES), axis=0)

    # Single cross-lane reduce per core, at the end of its row range.
    @pl.when(i == pl.num_programs(1) - 1)
    def _():
        o_ref[0, 0] = jnp.sum(acc_ref[...])


def _tpu_budget():
    """Best-effort query of per-core VMEM capacity and TensorCore count."""
    vmem_cap = 64 << 20   # conservative default (v7x per-TC physical VMEM)
    n_cores = 1
    try:
        info = pltpu.get_tpu_info()
        cap = getattr(info, "vmem_capacity_bytes", None)
        if isinstance(cap, int) and cap > 0:
            vmem_cap = cap
        for attr in ("num_tensorcores", "tensorcores_per_chip", "num_cores",
                     "cores_per_chip", "core_count"):
            v = getattr(info, attr, None)
            if isinstance(v, int) and v > 0:
                n_cores = v
                break
    except Exception:
        pass
    return vmem_cap, max(1, min(int(n_cores), 2))


def mse_loss(y_pre, y_tru):
    assert y_pre.shape == y_tru.shape, "shapes must match (no broadcasting needed)"
    n_elem = int(y_pre.size)

    a = jnp.ravel(y_pre)   # keep original dtype in HBM; cast happens in-kernel
    b = jnp.ravel(y_tru)

    tail_sum = jnp.float32(0.0)
    n_main = (n_elem // CHUNK) * CHUNK
    if n_main == 0:
        # Tiny input (< 1024 elems): pad to one (8, 128) chunk (cheap).
        # Zero-padded positions match in both arrays -> contribute 0 to the sum.
        pad = CHUNK - n_elem
        a = jnp.pad(a, (0, pad))
        b = jnp.pad(b, (0, pad))
        n_main = CHUNK
    elif n_main < n_elem:
        # Ragged tail (< 1024 elems) summed in plain JAX; avoids re-copying /
        # padding the full arrays just for the tail.
        ta = a[n_main:].astype(jnp.float32)
        tb = b[n_main:].astype(jnp.float32)
        tail_sum = jnp.sum((ta - tb) ** 2)
        a = a[:n_main]
        b = b[:n_main]

    num_rows = n_main // LANES          # multiple of 8 by construction
    a2 = a.reshape(num_rows, LANES)     # free view (no copy)
    b2 = b.reshape(num_rows, LANES)
    itemsize = int(a2.dtype.itemsize)

    vmem_cap, n_tc = _tpu_budget()

    # Keep input double buffers (2 operands x 2 pipeline buffers) under
    # min(VMEM/3, 32 MiB); tile rows a multiple of 8, capped at MAX_TILE_ROWS.
    in_buf_budget = min(vmem_cap // 3, 32 << 20)
    tile_rows = (in_buf_budget // 4) // (LANES * itemsize)
    tile_rows = max(SUBLANES, (tile_rows // SUBLANES) * SUBLANES)
    tile_rows = min(tile_rows, MAX_TILE_ROWS, num_rows)

    n_tiles = pl.cdiv(num_rows, tile_rows)
    # Only split across cores when a multi-TC chip was detected and there is
    # enough work; single-TC chips get a single sequential pass (no wasted
    # clamped-tile HBM traffic).
    n_cores = n_tc if (n_tc > 1 and n_tiles >= 2 * n_tc) else 1
    tiles_per_core = pl.cdiv(n_tiles, n_cores)

    def in_map(c, i):
        # Clamp so a redundant trailing tile (odd n_tiles on a 2-core split)
        # re-reads a valid block; its contribution is masked to zero in-kernel.
        return (jnp.minimum(c * tiles_per_core + i, n_tiles - 1), 0)

    kernel = functools.partial(
        _sq_diff_sum_kernel,
        num_rows=num_rows,
        tiles_per_core=tiles_per_core,
        tile_rows=tile_rows,
    )

    in_buf_bytes = 2 * 2 * tile_rows * LANES * itemsize
    vmem_limit = int(min(max(in_buf_bytes + (8 << 20), 24 << 20), 48 << 20))

    partials = pl.pallas_call(
        kernel,
        out_shape=jax.ShapeDtypeStruct((n_cores, 1), jnp.float32),
        grid_spec=pltpu.PrefetchScalarGridSpec(
            num_scalar_prefetch=0,
            grid=(n_cores, tiles_per_core),
            in_specs=[
                pl.BlockSpec((tile_rows, LANES), in_map),
                pl.BlockSpec((tile_rows, LANES), in_map),
            ],
            out_specs=pl.BlockSpec(
                (1, 1), lambda c, i: (c, 0), memory_space=pltpu.SMEM
            ),
            scratch_shapes=[pltpu.VMEM((SUBLANES, LANES), jnp.float32)],
        ),
        compiler_params=pltpu.CompilerParams(
            dimension_semantics=("parallel", "arbitrary"),
            vmem_limit_bytes=vmem_limit,
        ),
        cost_estimate=pl.CostEstimate(
            flops=3 * n_main,
            transcendentals=0,
            bytes_accessed=2 * n_main * itemsize + 4 * n_cores,
        ),
    )(a2, b2)

    return (jnp.sum(partials) + tail_sum) / jnp.float32(n_elem)


if __name__ == "__main__":
    key = jax.random.PRNGKey(0)
    k1, k2 = jax.random.split(key)
    # Small shapes consistent with a generic prediction/target tensor.
    y_pre = jax.random.normal(k1, (2, 4, 16, 16), dtype=jnp.float32)
    y_tru = jax.random.normal(k2, (2, 4, 16, 16), dtype=jnp.float32)

    loss = mse_loss(y_pre, y_tru)
    jax.block_until_ready(loss)

    # Reference check (same semantics as torch.mean((y_pre - y_tru) ** 2)).
    ref = jnp.mean((y_pre - y_tru) ** 2)
    assert jnp.allclose(loss, ref, rtol=1e-5, atol=1e-6), (loss, ref)

    print("KERNEL_OK")
</pallas_src>

<mosaic_0001>
module attributes {stable_mosaic.version = 11 : i64} {
  func.func @_sq_diff_sum_kernel(%arg0: i32, %arg1: i32, %arg2: memref<16x128xf32, #tpu.memory_space<vmem>>, %arg3: memref<16x128xf32, #tpu.memory_space<vmem>>, %arg4: memref<1x1xf32, #tpu.memory_space<smem>>, %arg5: memref<8x128xf32, #tpu.memory_space<vmem>>) attributes {dimension_semantics = [#tpu.dimension_semantics<parallel>, #tpu.dimension_semantics<arbitrary>], iteration_bounds = array<i64: 1, 1>, scalar_prefetch = 0 : i64, scratch_operands = 1 : i64, tpu.core_type = #tpu.core_type<tc>, window_params = [{transform_indices = @transform_0, window_bounds = array<i64: 16, 128>}, {transform_indices = @transform_1, window_bounds = array<i64: 16, 128>}, {transform_indices = @transform_2, window_bounds = array<i64: 1, 1>}]} {
    %c0_i32 = arith.constant 0 : i32
    %0 = arith.cmpi eq, %arg1, %c0_i32 : i32
    %1 = arith.extui %0 : i1 to i32
    %c0_i32_0 = arith.constant 0 : i32
    %2 = arith.cmpi ne, %1, %c0_i32_0 : i32
    scf.if %2 {
      %cst = arith.constant 0.000000e+00 : f32
      %20 = vector.broadcast %cst : f32 to vector<8x128xf32>
      %c0_10 = arith.constant 0 : index
      %c0_11 = arith.constant 0 : index
      %21 = vector.load %arg5[%c0_10, %c0_11] : memref<8x128xf32, #tpu.memory_space<vmem>>, vector<8x128xf32>
      tpu.vector_store %arg5[%c0_10, %c0_11], %20 {strides = array<i32>} : memref<8x128xf32, #tpu.memory_space<vmem>>, vector<8x128xf32>,
    } else {
    }
    %c0 = arith.constant 0 : index
    %c0_1 = arith.constant 0 : index
    %3 = vector.load %arg2[%c0, %c0_1] : memref<16x128xf32, #tpu.memory_space<vmem>>, vector<16x128xf32>
    %c0_2 = arith.constant 0 : index
    %c0_3 = arith.constant 0 : index
    %4 = vector.load %arg3[%c0_2, %c0_3] : memref<16x128xf32, #tpu.memory_space<vmem>>, vector<16x128xf32>
    %5 = arith.subf %3, %4 : vector<16x128xf32>
    %6 = arith.mulf %5, %5 : vector<16x128xf32>
    %c1_i32 = arith.constant 1 : i32
    %7 = arith.muli %arg0, %c1_i32 : i32
    %8 = arith.addi %7, %arg1 : i32
    %c16_i32 = arith.constant 16 : i32
    %9 = arith.muli %8, %c16_i32 : i32
    %c16_i32_4 = arith.constant 16 : i32
    %10 = arith.addi %9, %c16_i32_4 : i32
    %c16_i32_5 = arith.constant 16 : i32
    %11 = arith.cmpi sgt, %10, %c16_i32_5 : i32
    %true = arith.constant true
    %12 = arith.xori %11, %true : i1
    %13 = arith.extui %12 : i1 to i32
    %c0_i32_6 = arith.constant 0 : i32
    %14 = arith.cmpi ne, %13, %c0_i32_6 : i32
    scf.if %14 {
      %c0_10 = arith.constant 0 : index
      %c0_11 = arith.constant 0 : index
      %20 = vector.load %arg5[%c0_10, %c0_11] : memref<8x128xf32, #tpu.memory_space<vmem>>, vector<8x128xf32>
      %21 = vector.shape_cast %6 : vector<16x128xf32> to vector<2x8x128xf32>
      %cst = arith.constant dense<0.000000e+00> : vector<8x128xf32>
      %22 = vector.multi_reduction <add>, %21, %cst [0] : vector<2x8x128xf32> to vector<8x128xf32>
      %23 = arith.addf %20, %22 : vector<8x128xf32>
      %c0_12 = arith.constant 0 : index
      %c0_13 = arith.constant 0 : index
      %24 = vector.load %arg5[%c0_12, %c0_13] : memref<8x128xf32, #tpu.memory_space<vmem>>, vector<8x128xf32>
      tpu.vector_store %arg5[%c0_12, %c0_13], %23 {strides = array<i32>} : memref<8x128xf32, #tpu.memory_space<vmem>>, vector<8x128xf32>,
    } else {
    }
    %15 = arith.extui %11 : i1 to i32
    %c0_i32_7 = arith.constant 0 : i32
    %16 = arith.cmpi ne, %15, %c0_i32_7 : i32
    scf.if %16 {
      %20 = tpu.iota {dimensions = array<i32: 0>} : vector<16x1xi32>
      %21 = vector.broadcast %9 : i32 to vector<16x1xi32>
      %22 = arith.addi %21, %20 : vector<16x1xi32>
      %c16_i32_10 = arith.constant 16 : i32
      %23 = vector.broadcast %c16_i32_10 : i32 to vector<16x1xi32>
      %24 = arith.cmpi slt, %22, %23 : vector<16x1xi32>
      %cst = arith.constant 0.000000e+00 : f32
      %25 = vector.shape_cast %24 : vector<16x1xi1> to vector<16x1xi1>
      %26 = vector.broadcast %25 : vector<16x1xi1> to vector<16x128xi1>
      %27 = vector.broadcast %cst : f32 to vector<16x128xf32>
      %28 = arith.select %26, %6, %27 : vector<16x128xi1>, vector<16x128xf32>
      %c0_11 = arith.constant 0 : index
      %c0_12 = arith.constant 0 : index
      %29 = vector.load %arg5[%c0_11, %c0_12] : memref<8x128xf32, #tpu.memory_space<vmem>>, vector<8x128xf32>
      %30 = vector.shape_cast %28 : vector<16x128xf32> to vector<2x8x128xf32>
      %cst_13 = arith.constant dense<0.000000e+00> : vector<8x128xf32>
      %31 = vector.multi_reduction <add>, %30, %cst_13 [0] : vector<2x8x128xf32> to vector<8x128xf32>
      %32 = arith.addf %29, %31 : vector<8x128xf32>
      %c0_14 = arith.constant 0 : index
      %c0_15 = arith.constant 0 : index
      %33 = vector.load %arg5[%c0_14, %c0_15] : memref<8x128xf32, #tpu.memory_space<vmem>>, vector<8x128xf32>
      tpu.vector_store %arg5[%c0_14, %c0_15], %32 {strides = array<i32>} : memref<8x128xf32, #tpu.memory_space<vmem>>, vector<8x128xf32>,
    } else {
    }
    %c0_i32_8 = arith.constant 0 : i32
    %17 = arith.cmpi eq, %arg1, %c0_i32_8 : i32
    %18 = arith.extui %17 : i1 to i32
    %c0_i32_9 = arith.constant 0 : i32
    %19 = arith.cmpi ne, %18, %c0_i32_9 : i32
    scf.if %19 {
      %c0_10 = arith.constant 0 : index
      %c0_11 = arith.constant 0 : index
      %20 = vector.load %arg5[%c0_10, %c0_11] : memref<8x128xf32, #tpu.memory_space<vmem>>, vector<8x128xf32>
      %21 = vector.shape_cast %20 : vector<8x128xf32> to vector<1x8x128xf32>
      %cst = arith.constant dense<0.000000e+00> : vector<1xf32>
      %22 = vector.multi_reduction <add>, %21, %cst [1, 2] : vector<1x8x128xf32> to vector<1xf32>
      %23 = vector.shape_cast %22 : vector<1xf32> to vector<1x1x1xf32>
      %24 = vector.extract %23[0, 0, 0] : f32 from vector<1x1x1xf32>
      %c0_12 = arith.constant 0 : index
      %c0_13 = arith.constant 0 : index
      %25 = memref.load %arg4[%c0_12, %c0_13] : memref<1x1xf32, #tpu.memory_space<smem>>
      memref.store %24, %arg4[%c0_12, %c0_13] : memref<1x1xf32, #tpu.memory_space<smem>>
    } else {
    }
    return
  }
  func.func @transform_0(%arg0: i32, %arg1: i32) -> (i32, i32) {
    %c1_i32 = arith.constant 1 : i32
    %0 = arith.muli %arg0, %c1_i32 : i32
    %1 = arith.addi %0, %arg1 : i32
    %c0_i32 = arith.constant 0 : i32
    %2 = arith.minsi %1, %c0_i32 : i32
    %c0_i32_0 = arith.constant 0 : i32
    %c0_i32_1 = arith.constant 0 : i32
    return %2, %c0_i32_0 : i32, i32
  }
  func.func @transform_1(%arg0: i32, %arg1: i32) -> (i32, i32) {
    %c1_i32 = arith.constant 1 : i32
    %0 = arith.muli %arg0, %c1_i32 : i32
    %1 = arith.addi %0, %arg1 : i32
    %c0_i32 = arith.constant 0 : i32
    %2 = arith.minsi %1, %c0_i32 : i32
    %c0_i32_0 = arith.constant 0 : i32
    %c0_i32_1 = arith.constant 0 : i32
    return %2, %c0_i32_0 : i32, i32
  }
  func.func @transform_2(%arg0: i32, %arg1: i32) -> (i32, i32) {
    %c0_i32 = arith.constant 0 : i32
    %c0_i32_0 = arith.constant 0 : i32
    return %arg0, %c0_i32 : i32, i32
  }
}

</mosaic_0001>

<bundles_post_ra>
// kernel: tpu_custom_call.1
= control target key start
LH: loop header
LB: loop body
LE: loop exit
PB: predicated region body
PF: predicated region fallthrough
CT: control target
= control target key end

     0   :  { %7 = vsyncpa [#allocation4], 0  ;;  %s263_s0 = inlined_call_operand.hbm [shape: f32[16,128], index: 0, kind: input, shape index: {}]   ;;  %s264_s1 = inlined_call_operand.hbm [shape: f32[16,128], index: 1, kind: input, shape index: {}]   ;;  %s265_s2 = inlined_call_operand.hbm [shape: f32[1,1], index: 2, kind: output, shape index: {}]  }
   0x1   :  { %8 = vsyncpa [#allocation7], 0 }
   0x2   :  { %9 = vsyncpa [#allocation5], 0  ;;  %s207_s9 = smov [#allocation3]   ;;  %s147_s13 = scalar_lea.hbm %s263_s0, 256 }
   0x3   :  { %s21_s10 = sshll.u32 %s207_s9, 4  ;;  %p148_p0 = scmp.ne.s32.totalorder %s263_s0, %s147_s13  ;;  %s22_s10 = int_to_ptr.vmem [resolvable:$true] %s21_s10 }
   0x4   :  { %p151_p1 = scmp.lt.u32.totalorder %s147_s13, %s263_s0 }
   0x6   :  { %p153_p2 = pnand %p151_p1, %p148_p0 }
   0x8   :  { %156 = shalt.err (!%p153_p2)
}
   0x9   :  { %s157_s18 = scalar_lea.vmem %s22_s10, 256  ;;  %p162_p4 = scmp.lt.s32.totalorder %s22_s10, %s22_s10 }
   0xa   :  { %p158_p3 = scmp.ne.s32.totalorder %s22_s10, %s157_s18  ;;  %p163_p5 = scmp.lt.s32.totalorder %s157_s18, %s157_s18 }
   0xc   :  { %p164_p6 = por %p163_p5, %p162_p4 }
   0xe   :  { %p165_p7 = pnand %p164_p6, %p158_p3 }
  0x10   :  { %168 = shalt.err (!%p165_p7)
}
  0x11   :  { %s208_s19 = smov 128   ;;  %s209_s20 = smov 8  }
  0x12   :  { %27 = dma.hbm_to_vmem [thread:$0]  %s263_s0, 256, %s22_s10, [#allocation4], %s208_s19, %s208_s19, %s209_s20  }
  0x13   :  { %s210_s23 = smov [#allocation6]   ;;  %s169_s27 = scalar_lea.hbm %s264_s1, 256 }
  0x14   :  { %s39_s24 = sshll.u32 %s210_s23, 4  ;;  %p170_p8 = scmp.ne.s32.totalorder %s264_s1, %s169_s27  ;;  %s40_s24 = int_to_ptr.vmem [resolvable:$true] %s39_s24 }
  0x15   :  { %p173_p9 = scmp.lt.u32.totalorder %s169_s27, %s264_s1 }
  0x17   :  { %p175_p10 = pnand %p173_p9, %p170_p8 }
  0x19   :  { %178 = shalt.err (!%p175_p10)
}
  0x1a   :  { %s179_s4 = scalar_lea.vmem %s40_s24, 256  ;;  %p184_p12 = scmp.lt.s32.totalorder %s40_s24, %s40_s24 }
  0x1b   :  { %p180_p11 = scmp.ne.s32.totalorder %s40_s24, %s179_s4  ;;  %p185_p13 = scmp.lt.s32.totalorder %s179_s4, %s179_s4 }
  0x1d   :  { %p186_p0 = por %p185_p13, %p184_p12 }
  0x1f   :  { %p187_p1 = pnand %p186_p0, %p180_p11 }
  0x21   :  { %190 = shalt.err (!%p187_p1)
}
  0x22   :  { %45 = dma.hbm_to_vmem [thread:$0]  %s264_s1, 256, %s40_s24, [#allocation7], %s208_s19, %s208_s19, %s209_s20  }
  0x23   :  { %201 = dma.done.wait [#allocation4], 256  }
  0x24   :  { %202 = vsyncadd [#allocation4], 4294967040 }
  0x25   :  { %203 = dma.done.wait [#allocation7], 256  }
  0x26   :  { %204 = vsyncadd [#allocation7], 4294967040  ;;  %v65_v0 = vld [vmem:[#allocation3] sm:$0xff]  ;;  %v66_v1 = vld [vmem:[#allocation3 + $0x8] sm:$0xff]  ;;  %s191_s8 = scalar_lea.hbm %s265_s2, 16 }
  0x27   :  { %v67_v2 = vld [vmem:[#allocation6] sm:$0xff]  ;;  %v68_v3 = vld [vmem:[#allocation6 + $0x8] sm:$0xff]  ;;  %p192_p2 = scmp.ne.s32.totalorder %s265_s2, %s191_s8  ;;  %p195_p3 = scmp.lt.u32.totalorder %s191_s8, %s265_s2 }
  0x28   :  { %v69_v4 = vsub.f32 %v65_v0, %v67_v2  ;;  %v70_v5 = vsub.f32 %v66_v1, %v68_v3 }
  0x29   :  { %p197_p4 = pnand %p195_p3, %p192_p2 }
  0x2a   :  { %v71_v6 = vmul.f32 %v69_v4, %v69_v4  ;;  %v72_v7 = vmul.f32 %v70_v5, %v70_v5 }
  0x2c   :  { %v82_v8 = vadd.f32 %v72_v7, %v71_v6 }
  0x2e   :  { %110 = vadd.xlane.f32.xlu0 %v82_v8 }
  0xbb   :  { %v111_v9 = vpop.xlane.xlu0 %110 }
  0xbc   :  { %v112_v10 = vrot.slane %v111_v9, 4 }
  0xbe   :  { %v113_v11 = vadd.f32 %v112_v10, %v111_v9 }
  0xc0   :  { %v114_v12 = vrot.slane %v113_v11, 2 }
  0xc2   :  { %v115_v13 = vadd.f32 %v114_v12, %v113_v11 }
  0xc4   :  { %v116_v14 = vrot.slane %v115_v13, 1 }
  0xc6   :  { %v117_v15 = vadd.f32 %v116_v14, %v115_v13 }
  0xc8   :  { %140 = vpush %v117_v15 }
  0xf9   :  { %s141_s1 = spop %140 }
  0xfa   :  { %120 = sst [smem:[#allocation8]] %s141_s1 }
  0xfb   :  { %200 = shalt.err (!%p197_p4)
}
  0xfc   :  { %s211_s13 = smov [#allocation8]  }
  0xfd   :  { %128 = dma.smem_to_hbm %s211_s13, 16, %s265_s2, [#allocation5]  }
  0xfe   :  { %205 = dma.done.wait [#allocation5], 16  }
  0xff   :  { %206 = vsyncadd [#allocation5], 4294967280 }
 0x100   :  { %132 = sfence }
 0x101   :  { %133 = vsyncpa [#allocation4], 1 }
 0x102   :  { %134 = vsyncpa [#allocation7], 1 }
 0x103   :  { %135 = vsyncpa [#allocation5], 1 }

</bundles_post_ra>
